<compile_context>
chip_gen: v7x
topology: tpu7x:2x2x1
jax: 0.10.0
libtpu: 0.0.40
codegen_flags: <defaults>
</compile_context>

<pallas_src>
import jax
import jax.numpy as jnp
from jax.experimental import pallas as pl
from jax.experimental.pallas import tpu as pltpu


def _round_up(x, m):
    return ((x + m - 1) // m) * m


def _combine_kernel(x_ref, w_ref, b_ref, o_ref):
    # ReLU on the VPU, matmul on the MXU with f32 accumulation, bias in f32.
    x = jnp.maximum(x_ref[...], 0.0).astype(w_ref.dtype)
    acc = jnp.dot(x, w_ref[...], preferred_element_type=jnp.float32)
    o_ref[...] = (acc + b_ref[...]).astype(o_ref.dtype)


def prepare_params(weight, bias, compute_dtype=jnp.float32):
    """One-time parameter prep (hoisted out of the per-call path).

    weight: (E, 2E) as in nn.Linear -> W^T with natural (2E, E) shape
    (no padding); bias -> (1, E) f32.
    """
    E, two_e = weight.shape
    w_t = weight.T.astype(compute_dtype)            # (2E, E)
    b2d = bias.astype(jnp.float32).reshape(1, E)    # (1, E)
    return w_t, b2d


_VMEM_LIMIT_BYTES = 32 * 1024 * 1024    # accepted on v5e/v6e/v7x
_TILE_BUDGET_BYTES = 20 * 1024 * 1024   # headroom for compiler scratch


def _pick_block_m(B, two_e, E, x_bytes, w_bytes):
    """Largest row tile (cap 2048) whose double-buffered x+out tiles fit the
    VMEM budget next to the resident weight/bias, then capped so the grid has
    >= ~4 steps when B allows (keeps both v7x TensorCores busy)."""
    resident = two_e * E * w_bytes + E * 4
    tm = 2048
    while tm > 8 and 2 * tm * (two_e * x_bytes + E * 4) + resident > _TILE_BUDGET_BYTES:
        tm //= 2
    tm = min(tm, max(8, _round_up(pl.cdiv(B, 4), 8)))
    return max(8, tm)


@jax.jit
def combine_features_map(x, w_t, b2d):
    """forward(x) = relu(x) @ W^T + b, batch-tiled Pallas kernel.

    x: (B, 2E); w_t: (2E, E); b2d: (1, E) from prepare_params().
    """
    B, two_e = x.shape
    K, E = w_t.shape
    assert K == two_e, "weight shape does not match input feature dim"

    tm = _pick_block_m(B, two_e, E, x.dtype.itemsize, w_t.dtype.itemsize)
    grid_m = pl.cdiv(B, tm)   # partial edge tile handled by masked stores

    flops = 2 * B * two_e * E
    bytes_accessed = (x.size * x.dtype.itemsize
                      + w_t.size * w_t.dtype.itemsize
                      + b2d.size * 4
                      + B * E * x.dtype.itemsize)

    # At E=32 the resident W/bias are tiny; if embed_dim ever scales up,
    # single-buffer them (pipeline_mode=pl.Buffered(1)) and add a K/N grid
    # split with an f32 VMEM accumulator to stay inside v7x's VMEM budget.
    return pl.pallas_call(
        _combine_kernel,
        out_shape=jax.ShapeDtypeStruct((B, E), x.dtype),
        grid=(grid_m,),
        in_specs=[
            pl.BlockSpec((tm, two_e), lambda i: (i, 0)),  # x: streamed row tiles
            pl.BlockSpec((K, E), lambda i: (0, 0)),       # W^T: resident in VMEM
            pl.BlockSpec((1, E), lambda i: (0, 0)),       # bias: resident in VMEM
        ],
        out_specs=pl.BlockSpec((tm, E), lambda i: (i, 0)),  # (B, E) written directly
        compiler_params=pltpu.CompilerParams(
            dimension_semantics=("parallel",),   # row tiles independent -> 2 TCs on v7x
            vmem_limit_bytes=_VMEM_LIMIT_BYTES),
        cost_estimate=pl.CostEstimate(
            flops=flops, transcendentals=0, bytes_accessed=bytes_accessed),
    )(x, w_t, b2d)


if __name__ == "__main__":
    embed_dim = 32
    initrange = 0.1

    key = jax.random.PRNGKey(0)
    k_x, k_w, k_x2 = jax.random.split(key, 3)

    # Deterministic parameter init mirroring the PyTorch module:
    # weight ~ U(-initrange, initrange), bias = 0.
    weight = jax.random.uniform(
        k_w, (embed_dim, 2 * embed_dim), jnp.float32,
        minval=-initrange, maxval=initrange)
    bias = jnp.zeros((embed_dim,), jnp.float32)

    # One-time parameter prep (transpose + reshape, not per-forward).
    w_t, b2d = prepare_params(weight, bias)

    def reference(xi):
        return jnp.maximum(xi, 0.0) @ weight.T + bias

    # Literal module size (B=8).  In production this size should be fused in
    # XLA rather than dispatched as a Pallas kernel; it is run here to
    # validate the kernel at the module's native shape.
    x_small = jax.random.normal(k_x, (8, 2 * embed_dim), jnp.float32)
    out_small = jax.block_until_ready(combine_features_map(x_small, w_t, b2d))
    assert out_small.shape == (8, embed_dim)
    assert jnp.allclose(out_small, reference(x_small), atol=1e-2, rtol=1e-2)

    # Larger, non-tile-multiple batch: exercises the multi-step pipelined grid
    # and the masked partial edge tile (no pad / slice HBM passes around it).
    x_big = jax.random.normal(k_x2, (300, 2 * embed_dim), jnp.float32)
    out_big = jax.block_until_ready(combine_features_map(x_big, w_t, b2d))
    assert out_big.shape == (300, embed_dim)
    assert jnp.allclose(out_big, reference(x_big), atol=1e-2, rtol=1e-2)

    print("KERNEL_OK")
</pallas_src>

<mosaic_0001>
module attributes {stable_mosaic.version = 11 : i64} {
  func.func @_combine_kernel(%arg0: i32, %arg1: memref<8x64xf32, #tpu.memory_space<vmem>>, %arg2: memref<64x32xf32, #tpu.memory_space<vmem>>, %arg3: memref<1x32xf32, #tpu.memory_space<vmem>>, %arg4: memref<8x32xf32, #tpu.memory_space<vmem>>) attributes {dimension_semantics = [#tpu.dimension_semantics<parallel>], iteration_bounds = array<i64: 1>, scalar_prefetch = 0 : i64, scratch_operands = 0 : i64, tpu.core_type = #tpu.core_type<tc>, window_params = [{transform_indices = @transform_0, window_bounds = array<i64: 8, 64>}, {pipeline_mode = #tpu.pipeline_mode<synchronous>, transform_indices = @transform_1, window_bounds = array<i64: 64, 32>}, {pipeline_mode = #tpu.pipeline_mode<synchronous>, transform_indices = @transform_2, window_bounds = array<i64: 1, 32>}, {transform_indices = @transform_3, window_bounds = array<i64: 8, 32>}]} {
    %c0 = arith.constant 0 : index
    %c0_0 = arith.constant 0 : index
    %0 = vector.load %arg1[%c0, %c0_0] : memref<8x64xf32, #tpu.memory_space<vmem>>, vector<8x64xf32>
    %cst = arith.constant 0.000000e+00 : f32
    %1 = vector.broadcast %cst : f32 to vector<8x64xf32>
    %2 = arith.maximumf %0, %1 : vector<8x64xf32>
    %c0_1 = arith.constant 0 : index
    %c0_2 = arith.constant 0 : index
    %3 = vector.load %arg2[%c0_1, %c0_2] : memref<64x32xf32, #tpu.memory_space<vmem>>, vector<64x32xf32>
    %cst_3 = arith.constant dense<0.000000e+00> : vector<8x32xf32>
    %4 = tpu.matmul %2, %3, %cst_3 {dimension_numbers = #tpu.dot_dimension_numbers<[1], [0], [0], [1], [0, 0, 1, 1], [], []>} : vector<8x64xf32>, vector<64x32xf32>, vector<8x32xf32> -> vector<8x32xf32>
    %c0_4 = arith.constant 0 : index
    %c0_5 = arith.constant 0 : index
    %5 = vector.load %arg3[%c0_4, %c0_5] : memref<1x32xf32, #tpu.memory_space<vmem>>, vector<1x32xf32>
    %6 = vector.broadcast %5 : vector<1x32xf32> to vector<8x32xf32>
    %7 = arith.addf %4, %6 : vector<8x32xf32>
    %c0_6 = arith.constant 0 : index
    %c0_7 = arith.constant 0 : index
    %8 = vector.load %arg4[%c0_6, %c0_7] : memref<8x32xf32, #tpu.memory_space<vmem>>, vector<8x32xf32>
    tpu.vector_store %arg4[%c0_6, %c0_7], %7 {strides = array<i32>} : memref<8x32xf32, #tpu.memory_space<vmem>>, vector<8x32xf32>,
    return
  }
  func.func @transform_0(%arg0: i32) -> (i32, i32) {
    %c0_i32 = arith.constant 0 : i32
    %c0_i32_0 = arith.constant 0 : i32
    return %arg0, %c0_i32 : i32, i32
  }
  func.func @transform_1(%arg0: i32) -> (i32, i32) {
    %c0_i32 = arith.constant 0 : i32
    %c0_i32_0 = arith.constant 0 : i32
    %c0_i32_1 = arith.constant 0 : i32
    return %c0_i32, %c0_i32_0 : i32, i32
  }
  func.func @transform_2(%arg0: i32) -> (i32, i32) {
    %c0_i32 = arith.constant 0 : i32
    %c0_i32_0 = arith.constant 0 : i32
    %c0_i32_1 = arith.constant 0 : i32
    return %c0_i32, %c0_i32_0 : i32, i32
  }
  func.func @transform_3(%arg0: i32) -> (i32, i32) {
    %c0_i32 = arith.constant 0 : i32
    %c0_i32_0 = arith.constant 0 : i32
    return %arg0, %c0_i32 : i32, i32
  }
}

</mosaic_0001>

<bundles_post_ra>
// kernel: combine_features_map.1
= control target key start
LH: loop header
LB: loop body
LE: loop exit
PB: predicated region body
PF: predicated region fallthrough
CT: control target
= control target key end

     0   :  { %v192_v3 = vmov 0.0|0.0   ;;  %vm193_vm0 = vmmov 0   ;;  %v194_v6 = vmov 0.0   ;;  %s258_s0 = inlined_call_operand.vmem [shape: f32[8,64], index: 0, kind: input, shape index: {}]   ;;  %s259_s1 = inlined_call_operand.vmem [shape: f32[64,32], index: 1, kind: input, shape index: {}]   ;;  %s260_s2 = inlined_call_operand.vmem [shape: f32[1,32], index: 2, kind: input, shape index: {}]   ;;  %s261_s3 = inlined_call_operand.hbm [shape: f32[8,32], index: 3, kind: output, shape index: {}]  }
   0x1   :  { %v17_v0 = vld [vmem:[%s259_s1] sm:$0xff]  ;;  %v18_v1 = vld [vmem:[%s259_s1 + $0x8] sm:$0xff]  ;;  %v19_v2 = vld [vmem:[%s259_s1 + $0x10] sm:$0xff]  ;;  %152 = vmatprep.subr.bf16.mxu0 %v192_v3  ;;  %149 = vmatprep.mubr.msk.f32.mxu0 %vm193_vm0, %v194_v6 }
   0x2   :  { %v153_v4 = vpack.c.bf16 %v18_v1, %v17_v0  ;;  %v20_v5 = vld [vmem:[%s259_s1 + $0x18] sm:$0xff] }
   0x3   :  { %v156_v7 = vpack.c.bf16 %v20_v5, %v19_v2 }
   0x4   :  { %154 = vmatpush3.bf16.msra.mxu0 %v153_v4 }
   0x5   :  { %8 = vsyncpa [#allocation3], 0  ;;  %155 = vmatprep.subr.bf16.mxu0 %v192_v3  ;;  %v21_v8 = vld [vmem:[%s259_s1 + $0x20] sm:$0xff]  ;;  %v22_v9 = vld [vmem:[%s259_s1 + $0x28] sm:$0xff]  ;;  %vm32_vm1 = vcmask 523264   ;;  %s195_s5 = smov [#allocation2]  }
   0x6   :  { %v159_v10 = vpack.c.bf16 %v22_v9, %v21_v8  ;;  %v23_v11 = vld [vmem:[%s259_s1 + $0x30] sm:$0xff]  ;;  %v24_v12 = vld [vmem:[%s259_s1 + $0x38] sm:$0xff]  ;;  %v15_v14 = vld [vmem:[%s258_s0] sm:$0xff]  ;;  %s114_s6 = sshll.u32 %s195_s5, 4  ;;  %vm106_vm2 = vcmask 261120   ;;  %s115_s6 = int_to_ptr.vmem [resolvable:$true] %s114_s6 }
   0x7   :  { %v162_v13 = vpack.c.bf16 %v24_v12, %v23_v11  ;;  %v16_v15 = vmax.f32 %v15_v14, 0.0  ;;  %v122_v16 = vld [vmem:[%s260_s2] ss:$0 sm:$0xff]  ;;  %s168_s1 = scalar_lea.vmem %s115_s6, 128  ;;  %p173_p1 = scmp.lt.s32.totalorder %s115_s6, %s115_s6 }
   0x8   :  { %157 = vmatpush3.bf16.msra.mxu0 %v156_v7  ;;  %p169_p0 = scmp.ne.s32.totalorder %s115_s6, %s168_s1  ;;  %p174_p2 = scmp.lt.s32.totalorder %s168_s1, %s168_s1 }
   0x9   :  { %158 = vmatprep.subr.bf16.mxu0 %v192_v3 }
   0xa   :  { %p175_p3 = por %p174_p2, %p173_p1 }
   0xc   :  { %160 = vmatpush3.bf16.msra.mxu0 %v159_v10  ;;  %p176_p4 = pnand %p175_p3, %p169_p0 }
   0xd   :  { %161 = vmatprep.subr.bf16.mxu0 %v192_v3 }
  0x10   :  { %163 = vmatpush3.bf16.msra.mxu0 %v162_v13 }
  0x13   :  { %150 = vmatmul.mubr.msk.f32.vlgmr.msra.gmra.mrb[0].mxu0 %vm32_vm1, %v16_v15 }
  0xe6   :  { %v102_v17 = vpop.f32.mrb[0].mxu0 }
  0xe7   :  { %v103_v18 = vadd.f32 %v122_v16, %v102_v17  ;;  %v151_v19 = vpop.f32.mrb[1].mxu0 }
  0xe9   :  { %107 = vst.msk [vmem:[#allocation2] sm:$0xff] %vm106_vm2, %v103_v18 }
  0xea   :  { %179 = shalt.err (!%p176_p4)
}
  0xeb   :  { %s180_s8 = scalar_lea.hbm %s261_s3, 128 }
  0xec   :  { %p181_p5 = scmp.ne.s32.totalorder %s261_s3, %s180_s8  ;;  %p184_p6 = scmp.lt.u32.totalorder %s180_s8, %s261_s3 }
  0xee   :  { %p186_p7 = pnand %p184_p6, %p181_p5 }
  0xf0   :  { %189 = shalt.err (!%p186_p7)
}
  0xf1   :  { %117 = dma.vmem_to_hbm [thread:$0]  %s115_s6, 128, %s261_s3, [#allocation3]  }
  0xf2   :  { %190 = dma.done.wait [#allocation3], 128  }
  0xf3   :  { %191 = vsyncadd [#allocation3], 4294967168 }
  0xf4   :  { %121 = vsyncpa [#allocation3], 1 }

</bundles_post_ra>
